<compile_context>
chip_gen: v7x
topology: tpu7x:2x2x1
jax: 0.10.0
libtpu: 0.0.40
codegen_flags: <defaults>
</compile_context>

<pallas_src>
import jax
import jax.numpy as jnp
from jax import lax
from jax.experimental import pallas as pl
from jax.experimental.pallas import tpu as pltpu


def _round_up(x: int, m: int) -> int:
    return ((x + m - 1) // m) * m


def _hier_embedding_kernel(idx_ref, tbl_ref, out_ref):
    """idx_ref: (tile_n, 4) int32 pre-offset, pre-clamped row indices into the fused table.
       tbl_ref: (v_pad, d_total) block-diagonal fused embedding table (f32 or bf16).
       out_ref: (tile_n, d_total) concatenated embeddings."""
    idx = idx_ref[...]                        # (tile_n, 4)
    tbl = tbl_ref[...]                        # (v_pad, d_total)
    tile_n = out_ref.shape[0]
    v_pad = tbl_ref.shape[0]

    # One iota, four compares, three ORs, one cast.  The four index ranges are disjoint
    # by construction (row offsets + clamping), so the OR builds exactly 4 hot lanes/row.
    lanes = lax.broadcasted_iota(jnp.int32, (tile_n, v_pad), 1)
    hot = (lanes == idx[:, 0:1]) | (lanes == idx[:, 1:2]) \
        | (lanes == idx[:, 2:3]) | (lanes == idx[:, 3:4])
    # Cast bool -> table dtype directly (bf16 in the bf16 path): no f32 intermediate.
    multihot = hot.astype(tbl.dtype)

    # Single fused MXU matmul == gather of all four embeddings, already contiguous along
    # the feature axis (block-diagonal table).  Direct store to the output block.
    out_ref[...] = jnp.dot(
        multihot, tbl, preferred_element_type=jnp.float32).astype(out_ref.dtype)


def _choose_tile_n(n_tokens: int, max_tile_n: int) -> int:
    """Block second-minor dim must be a multiple of 8 OR equal the full array dim."""
    if n_tokens < 1024:
        # Tiny input: one full block (block dim == array dim is always legal).
        return n_tokens
    if n_tokens <= 2 * max_tile_n:
        # Split into >= 2 blocks so the single "parallel" grid axis can be sharded
        # across v7x's two TensorCores; keep a multiple of 128 for full MXU M-dim.
        return min(max_tile_n, _round_up(pl.cdiv(n_tokens, 2), 128))
    return max_tile_n


def make_hier_embedding_forward(loc_table, week_table, hour_table, dur_table, *,
                                table_dtype=jnp.float32, out_dtype=jnp.float32,
                                max_tile_n=4096):
    """Build the fused table once (init-time) and return a jitted forward(src, week,
    hour, duration) -> (B, T, D_total).  Indices are clamped into range (torch would
    raise on out-of-range).  Dropout is identity (eval mode)."""
    v_loc, d_loc = loc_table.shape
    v_week, d_week = week_table.shape
    v_hour, d_hour = hour_table.shape
    v_dur, d_dur = dur_table.shape
    d_total = d_loc + d_week + d_hour + d_dur
    v_total = v_loc + v_week + v_hour + v_dur
    v_pad = _round_up(v_total, 128)           # 128-aligned K for clean MXU cadence

    if v_pad > 4096:
        # TODO(synk): gather-based location lookup (scalar-prefetch / pl.Element row
        # index_map or manual make_async_copy gather) for realistic vocabularies; the
        # one-hot matmul scales O(V_pad) in VPU work, FLOPs and VMEM.
        raise NotImplementedError(
            "hier_embedding one-hot-matmul path is gated to small fused vocabularies "
            f"(v_pad={v_pad} > 4096); use a gather-based location lookup instead.")

    # --- fused block-diagonal table, built ONCE at init ---------------------------
    fused = jnp.zeros((v_pad, d_total), table_dtype)
    row, col = 0, 0
    for tbl in (loc_table, week_table, hour_table, dur_table):
        v, d = tbl.shape
        fused = fused.at[row:row + v, col:col + d].set(tbl.astype(table_dtype))
        row += v
        col += d

    off_week = v_loc
    off_hour = v_loc + v_week
    off_dur = v_loc + v_week + v_hour

    @jax.jit
    def forward(src, week, hour, duration):
        B, T = src.shape
        n = B * T
        tile_n = _choose_tile_n(n, max_tile_n)
        grid = pl.cdiv(n, tile_n)

        # Clamp (keeps the fused-table row ranges disjoint), offset and pack.  This is a
        # single fused XLA op writing 16 B/token (vs 224 B/token kernel output); the
        # offset adds fuse for free here, which is cheaper than per-tile VALU adds.
        idx = jnp.stack(
            [jnp.clip(src.reshape(n).astype(jnp.int32), 0, v_loc - 1),
             jnp.clip(week.reshape(n).astype(jnp.int32), 0, v_week - 1) + off_week,
             jnp.clip(hour.reshape(n).astype(jnp.int32), 0, v_hour - 1) + off_hour,
             jnp.clip(duration.reshape(n).astype(jnp.int32), 0, v_dur - 1) + off_dur],
            axis=-1)                          # (n, 4) int32

        out = pl.pallas_call(
            _hier_embedding_kernel,
            # Unpadded output + cdiv grid: the partial edge block is masked by Pallas,
            # so there is no post-kernel slice / extra HBM pass.
            out_shape=jax.ShapeDtypeStruct((n, d_total), out_dtype),
            grid_spec=pltpu.PrefetchScalarGridSpec(
                num_scalar_prefetch=0,
                grid=(grid,),
                in_specs=[
                    pl.BlockSpec((tile_n, 4), lambda i: (i, 0)),
                    # Grid-invariant table: fetched once.  For large fused tables, add
                    # pipeline_mode=pl.Buffered(1) here to drop the second resident copy.
                    pl.BlockSpec((v_pad, d_total), lambda i: (0, 0)),
                ],
                out_specs=pl.BlockSpec((tile_n, d_total), lambda i: (i, 0)),
            ),
            compiler_params=pltpu.CompilerParams(
                dimension_semantics=("parallel",),      # megacore sharding on v7x
                vmem_limit_bytes=32 * 1024 * 1024,      # headroom above v5e's 16 MiB default
            ),
        )(idx, fused)

        return out.reshape(B, T, d_total)

    return forward


def _reference(src, week, hour, duration, loc_table, week_table, hour_table, dur_table):
    return jnp.concatenate(
        [jnp.take(loc_table, src, axis=0),
         jnp.take(week_table, week, axis=0),
         jnp.take(hour_table, hour, axis=0),
         jnp.take(dur_table, duration, axis=0)],
        axis=-1)


if __name__ == "__main__":
    # Module hyper-params (small, consistent with __init__):
    num_vocab = 32
    location_embedding_dims = [8, 8, 16]   # sum = 32 (HIERSpatialEmbedding table width)
    week_dim, hour_dim, dur_dim = 8, 8, 8
    d_total = sum(location_embedding_dims) + week_dim + hour_dim + dur_dim

    key = jax.random.PRNGKey(0)
    (k_loc, k_week, k_hour, k_dur,
     k_s1, k_w1, k_h1, k_d1, k_s2, k_w2, k_h2, k_d2) = jax.random.split(key, 12)

    # nn.Embedding default init: N(0, 1)
    loc_table = jax.random.normal(k_loc, (num_vocab, sum(location_embedding_dims)), jnp.float32)
    week_table = jax.random.normal(k_week, (7, week_dim), jnp.float32)
    hour_table = jax.random.normal(k_hour, (24, hour_dim), jnp.float32)
    dur_table = jax.random.normal(k_dur, (24, dur_dim), jnp.float32)

    forward = make_hier_embedding_forward(loc_table, week_table, hour_table, dur_table)

    # --- test 1: tiny (B=2, T=8) -> single full block ------------------------------
    B, T = 2, 8
    src = jax.random.randint(k_s1, (B, T), 0, num_vocab, jnp.int32)
    week = jax.random.randint(k_w1, (B, T), 0, 7, jnp.int32)
    hour = jax.random.randint(k_h1, (B, T), 0, 24, jnp.int32)
    duration = jax.random.randint(k_d1, (B, T), 0, 24, jnp.int32)

    out = jax.block_until_ready(forward(src, week, hour, duration))
    ref = _reference(src, week, hour, duration, loc_table, week_table, hour_table, dur_table)
    assert out.shape == (B, T, d_total)
    assert jnp.allclose(out, ref, atol=1e-5, rtol=1e-5), "mismatch vs reference (tiny)"

    # --- test 2: (B=5, T=250) -> multi-step grid with a partial (masked) edge block --
    B2, T2 = 5, 250
    src2 = jax.random.randint(k_s2, (B2, T2), 0, num_vocab, jnp.int32)
    week2 = jax.random.randint(k_w2, (B2, T2), 0, 7, jnp.int32)
    hour2 = jax.random.randint(k_h2, (B2, T2), 0, 24, jnp.int32)
    duration2 = jax.random.randint(k_d2, (B2, T2), 0, 24, jnp.int32)

    out2 = jax.block_until_ready(forward(src2, week2, hour2, duration2))
    ref2 = _reference(src2, week2, hour2, duration2, loc_table, week_table, hour_table, dur_table)
    assert out2.shape == (B2, T2, d_total)
    assert jnp.allclose(out2, ref2, atol=1e-5, rtol=1e-5), "mismatch vs reference (grid)"

    # --- test 3: opt-in bf16 table/output path (halves writeback; bf16 rounding) -----
    forward_bf16 = make_hier_embedding_forward(
        loc_table, week_table, hour_table, dur_table,
        table_dtype=jnp.bfloat16, out_dtype=jnp.bfloat16)
    out_bf16 = jax.block_until_ready(forward_bf16(src, week, hour, duration))
    assert out_bf16.shape == (B, T, d_total)
    assert out_bf16.dtype == jnp.bfloat16
    assert jnp.allclose(out_bf16.astype(jnp.float32), ref, atol=2e-2, rtol=2e-2), \
        "mismatch vs reference (bf16 path)"

    print("KERNEL_OK")
</pallas_src>

<mosaic_0001>
module attributes {stable_mosaic.version = 11 : i64} {
  func.func @_hier_embedding_kernel(%arg0: i32, %arg1: memref<16x4xi32, #tpu.memory_space<vmem>>, %arg2: memref<128x56xf32, #tpu.memory_space<vmem>>, %arg3: memref<16x56xf32, #tpu.memory_space<vmem>>) attributes {dimension_semantics = [#tpu.dimension_semantics<parallel>], iteration_bounds = array<i64: 1>, scalar_prefetch = 0 : i64, scratch_operands = 0 : i64, tpu.core_type = #tpu.core_type<tc>, window_params = [{transform_indices = @transform_0, window_bounds = array<i64: 16, 4>}, {pipeline_mode = #tpu.pipeline_mode<synchronous>, transform_indices = @transform_1, window_bounds = array<i64: 128, 56>}, {transform_indices = @transform_2, window_bounds = array<i64: 16, 56>}]} {
    %c0 = arith.constant 0 : index
    %c0_0 = arith.constant 0 : index
    %0 = vector.load %arg1[%c0, %c0_0] : memref<16x4xi32, #tpu.memory_space<vmem>>, vector<16x4xi32>
    %c0_1 = arith.constant 0 : index
    %c0_2 = arith.constant 0 : index
    %1 = vector.load %arg2[%c0_1, %c0_2] : memref<128x56xf32, #tpu.memory_space<vmem>>, vector<128x56xf32>
    %2 = tpu.iota {dimensions = array<i32: 1>} : vector<16x128xi32>
    %3 = vector.extract_strided_slice %0 {offsets = [0, 0], sizes = [16, 1], strides = [1, 1]} : vector<16x4xi32> to vector<16x1xi32>
    %4 = vector.broadcast %3 : vector<16x1xi32> to vector<16x128xi32>
    %5 = arith.cmpi eq, %2, %4 : vector<16x128xi32>
    %6 = vector.extract_strided_slice %0 {offsets = [0, 1], sizes = [16, 1], strides = [1, 1]} : vector<16x4xi32> to vector<16x1xi32>
    %7 = vector.broadcast %6 : vector<16x1xi32> to vector<16x128xi32>
    %8 = arith.cmpi eq, %2, %7 : vector<16x128xi32>
    %9 = arith.ori %5, %8 : vector<16x128xi1>
    %10 = vector.extract_strided_slice %0 {offsets = [0, 2], sizes = [16, 1], strides = [1, 1]} : vector<16x4xi32> to vector<16x1xi32>
    %11 = vector.broadcast %10 : vector<16x1xi32> to vector<16x128xi32>
    %12 = arith.cmpi eq, %2, %11 : vector<16x128xi32>
    %13 = arith.ori %9, %12 : vector<16x128xi1>
    %14 = vector.extract_strided_slice %0 {offsets = [0, 3], sizes = [16, 1], strides = [1, 1]} : vector<16x4xi32> to vector<16x1xi32>
    %15 = vector.broadcast %14 : vector<16x1xi32> to vector<16x128xi32>
    %16 = arith.cmpi eq, %2, %15 : vector<16x128xi32>
    %17 = arith.ori %13, %16 : vector<16x128xi1>
    %18 = arith.extui %17 : vector<16x128xi1> to vector<16x128xi32>
    %19 = arith.sitofp %18 : vector<16x128xi32> to vector<16x128xf32>
    %cst = arith.constant dense<0.000000e+00> : vector<16x56xf32>
    %20 = tpu.matmul %19, %1, %cst {dimension_numbers = #tpu.dot_dimension_numbers<[1], [0], [0], [1], [0, 0, 1, 1], [], []>} : vector<16x128xf32>, vector<128x56xf32>, vector<16x56xf32> -> vector<16x56xf32>
    %c0_3 = arith.constant 0 : index
    %c0_4 = arith.constant 0 : index
    %21 = vector.load %arg3[%c0_3, %c0_4] : memref<16x56xf32, #tpu.memory_space<vmem>>, vector<16x56xf32>
    tpu.vector_store %arg3[%c0_3, %c0_4], %20 {strides = array<i32>} : memref<16x56xf32, #tpu.memory_space<vmem>>, vector<16x56xf32>,
    return
  }
  func.func @transform_0(%arg0: i32) -> (i32, i32) {
    %c0_i32 = arith.constant 0 : i32
    %c0_i32_0 = arith.constant 0 : i32
    return %arg0, %c0_i32 : i32, i32
  }
  func.func @transform_1(%arg0: i32) -> (i32, i32) {
    %c0_i32 = arith.constant 0 : i32
    %c0_i32_0 = arith.constant 0 : i32
    %c0_i32_1 = arith.constant 0 : i32
    return %c0_i32, %c0_i32_0 : i32, i32
  }
  func.func @transform_2(%arg0: i32) -> (i32, i32) {
    %c0_i32 = arith.constant 0 : i32
    %c0_i32_0 = arith.constant 0 : i32
    return %arg0, %c0_i32 : i32, i32
  }
}

</mosaic_0001>

<bundles_post_ra>
// kernel: forward.1
= control target key start
LH: loop header
LB: loop body
LE: loop exit
PB: predicated region body
PF: predicated region fallthrough
CT: control target
= control target key end

     0   :  { %7 = vsyncpa [#allocation3], 0  ;;  %s397_s0 = inlined_call_operand.vmem [shape: s32[16,4], index: 0, kind: input, shape index: {}]   ;;  %s398_s1 = inlined_call_operand.hbm [shape: f32[128,56], index: 1, kind: input, shape index: {}]   ;;  %s399_s2 = inlined_call_operand.hbm [shape: f32[16,56], index: 2, kind: output, shape index: {}]  }
   0x1   :  { %8 = vsyncpa [#allocation4], 0  ;;  %s337_s9 = smov [#allocation2]   ;;  %s289_s13 = scalar_lea.hbm %s398_s1, 2048 }
   0x2   :  { %s16_s10 = sshll.u32 %s337_s9, 4  ;;  %p290_p0 = scmp.ne.s32.totalorder %s398_s1, %s289_s13  ;;  %s17_s10 = int_to_ptr.vmem [resolvable:$true] %s16_s10 }
   0x3   :  { %p293_p1 = scmp.lt.u32.totalorder %s289_s13, %s398_s1 }
   0x5   :  { %p295_p2 = pnand %p293_p1, %p290_p0 }
   0x7   :  { %298 = shalt.err (!%p295_p2)
}
   0x8   :  { %s299_s18 = scalar_lea.vmem %s17_s10, 2048  ;;  %p304_p4 = scmp.lt.s32.totalorder %s17_s10, %s17_s10 }
   0x9   :  { %p300_p3 = scmp.ne.s32.totalorder %s17_s10, %s299_s18  ;;  %p305_p5 = scmp.lt.s32.totalorder %s299_s18, %s299_s18 }
   0xb   :  { %p306_p6 = por %p305_p5, %p304_p4 }
   0xd   :  { %p307_p7 = pnand %p306_p6, %p300_p3 }
   0xf   :  { %310 = shalt.err (!%p307_p7)
}
  0x10   :  { %s338_s19 = smov 128   ;;  %s339_s20 = smov 8  }
  0x11   :  { %22 = dma.hbm_to_vmem [thread:$0]  %s398_s1, 2048, %s17_s10, [#allocation3], %s338_s19, %s338_s19, %s339_s20  }
  0x12   :  { %333 = dma.done.wait [#allocation3], 2048  }
  0x13   :  { %334 = vsyncadd [#allocation3], 4294965248  ;;  %v340_v0 = vmov 0   ;;  %v27_v1 = vld [vmem:[%s397_s0 + $0x8] sm:$0xff]  ;;  %v26_v2 = vld [vmem:[%s397_s0] sm:$0xff]  ;;  %v341_v9 = vmov 1   ;;  %v44_v32 = vlaneseq }
  0x14   :  { %283 = vset.pattern.permute.xlu1 %v340_v0  ;;  %281 = vset.pattern.permute.xlu0 %v340_v0  ;;  %v28_v3 = vld [vmem:[#allocation2] sm:$0xff]  ;;  %v29_v4 = vld [vmem:[#allocation2 + $0x8] sm:$0xff]  ;;  %v30_v5 = vld [vmem:[#allocation2 + $0x10] sm:$0xff]  ;;  %v342_v13 = vmov 2   ;;  %v343_v19 = vmov 3   ;;  %v344_v39 = vmov 1.0  }
  0x15   :  { %50 = vperm.xlu1 %283, %v27_v1   ;;  %47 = vperm.xlu0 %281, %v26_v2   ;;  %v31_v6 = vld [vmem:[#allocation2 + $0x18] sm:$0xff]  ;;  %v240_v7 = vpack.c.bf16 %v29_v4, %v28_v3  ;;  %v32_v10 = vld [vmem:[#allocation2 + $0x20] sm:$0xff]  ;;  %v33_v11 = vld [vmem:[#allocation2 + $0x28] sm:$0xff]  ;;  %v45_v34 = vand.u32 127, %v44_v32  ;;  %s345_s0 = smov [#allocation5]   ;;  %vm163_vm14 = vcmask 457728  }
  0x16   :  { %v244_v8 = vpack.c.bf16 %v31_v6, %v30_v5  ;;  %v248_v12 = vpack.c.bf16 %v33_v11, %v32_v10  ;;  %v34_v14 = vld [vmem:[#allocation2 + $0x30] sm:$0xff]  ;;  %v35_v15 = vld [vmem:[#allocation2 + $0x38] sm:$0xff]  ;;  %v36_v17 = vld [vmem:[#allocation2 + $0x40] sm:$0xff]  ;;  %s171_s1 = sshll.u32 %s345_s0, 4  ;;  %s172_s1 = int_to_ptr.vmem [resolvable:$true] %s171_s1 }
  0x17   :  { %241 = vmatprep.subr.bf16.mxu0 %v240_v7  ;;  %v252_v16 = vpack.c.bf16 %v35_v15, %v34_v14  ;;  %v37_v18 = vld [vmem:[#allocation2 + $0x48] sm:$0xff]  ;;  %v38_v21 = vld [vmem:[#allocation2 + $0x50] sm:$0xff]  ;;  %v39_v22 = vld [vmem:[#allocation2 + $0x58] sm:$0xff]  ;;  %s311_s27 = scalar_lea.vmem %s172_s1, 256  ;;  %p316_p9 = scmp.lt.s32.totalorder %s172_s1, %s172_s1 }
  0x18   :  { %243 = vmatpush3.bf16.msra.mxu0 %v240_v7  ;;  %v256_v20 = vpack.c.bf16 %v37_v18, %v36_v17  ;;  %v260_v23 = vpack.c.bf16 %v39_v22, %v38_v21  ;;  %v40_v24 = vld [vmem:[#allocation2 + $0x60] sm:$0xff]  ;;  %v41_v25 = vld [vmem:[#allocation2 + $0x68] sm:$0xff]  ;;  %v42_v27 = vld [vmem:[#allocation2 + $0x70] sm:$0xff]  ;;  %p312_p8 = scmp.ne.s32.totalorder %s172_s1, %s311_s27  ;;  %p317_p10 = scmp.lt.s32.totalorder %s311_s27, %s311_s27 }
  0x19   :  { %284 = vset.pattern.permute.xlu1 %v341_v9  ;;  %282 = vset.pattern.permute.xlu0 %v341_v9  ;;  %v264_v26 = vpack.c.bf16 %v41_v25, %v40_v24  ;;  %v43_v28 = vld [vmem:[#allocation2 + $0x78] sm:$0xff] }
  0x1a   :  { %58 = vperm.xlu1 %284, %v27_v1   ;;  %55 = vperm.xlu0 %282, %v26_v2   ;;  %v268_v29 = vpack.c.bf16 %v43_v28, %v42_v27  ;;  %p318_p11 = por %p317_p10, %p316_p9 }
  0x1b   :  { %245 = vmatprep.subr.bf16.mxu0 %v244_v8 }
  0x1c   :  { %247 = vmatpush3.bf16.msra.mxu0 %v244_v8  ;;  %p319_p12 = pnand %p318_p11, %p312_p8 }
  0x1d   :  { %249 = vmatprep.subr.bf16.mxu0 %v248_v12 }
  0x1e   :  { %285 = vset.pattern.permute.xlu1 %v342_v13  ;;  %286 = vset.pattern.permute.xlu0 %v342_v13 }
  0x1f   :  { %65 = vperm.xlu1 %285, %v26_v2   ;;  %68 = vperm.xlu0 %286, %v27_v1  }
  0x20   :  { %251 = vmatpush3.bf16.msra.mxu0 %v248_v12 }
  0x21   :  { %253 = vmatprep.subr.bf16.mxu0 %v252_v16 }
  0x23   :  { %287 = vset.pattern.permute.xlu1 %v343_v19  ;;  %288 = vset.pattern.permute.xlu0 %v343_v19 }
  0x24   :  { %75 = vperm.xlu1 %287, %v26_v2   ;;  %255 = vmatpush3.bf16.msra.mxu0 %v252_v16 }
  0x25   :  { %257 = vmatprep.subr.bf16.mxu0 %v256_v20 }
  0x28   :  { %78 = vperm.xlu1 %287, %v27_v1   ;;  %259 = vmatpush3.bf16.msra.mxu0 %v256_v20 }
  0x29   :  { %261 = vmatprep.subr.bf16.mxu0 %v260_v23 }
  0x2c   :  { %263 = vmatpush3.bf16.msra.mxu0 %v260_v23 }
  0x2d   :  { %265 = vmatprep.subr.bf16.mxu0 %v264_v26 }
  0x30   :  { %267 = vmatpush3.bf16.msra.mxu0 %v264_v26 }
  0x31   :  { %269 = vmatprep.subr.bf16.mxu0 %v268_v29 }
  0x34   :  { %271 = vmatpush3.bf16.msra.mxu0 %v268_v29 }
  0x94   :  { %v51_v30 = vpop.permute.xlu1 %50  ;;  %v48_v31 = vpop.permute.xlu0 %47 }
  0x95   :  { %vm52_vm0 = vcmp.eq.s32.totalorder %v45_v34, %v48_v31  ;;  %vm53_vm9 = vcmp.eq.s32.totalorder %v45_v34, %v51_v30 }
  0x99   :  { %v59_v33 = vpop.permute.xlu1 %58  ;;  %v56_v35 = vpop.permute.xlu0 %55 }
  0x9a   :  { %vm60_vm1 = vcmp.eq.s32.totalorder %v45_v34, %v56_v35  ;;  %vm61_vm4 = vcmp.eq.s32.totalorder %v45_v34, %v59_v33 }
  0x9b   :  { %vm62_vm2 = vmor %vm52_vm0, %vm60_vm1 }
  0x9c   :  { %vm63_vm10 = vmor %vm53_vm9, %vm61_vm4 }
  0x9e   :  { %v66_v36 = vpop.permute.xlu1 %65  ;;  %v69_v37 = vpop.permute.xlu0 %68 }
  0x9f   :  { %vm70_vm3 = vcmp.eq.s32.totalorder %v45_v34, %v66_v36  ;;  %vm71_vm7 = vcmp.eq.s32.totalorder %v45_v34, %v69_v37 }
  0xa0   :  { %vm72_vm6 = vmor %vm62_vm2, %vm70_vm3 }
  0xa1   :  { %vm73_vm11 = vmor %vm63_vm10, %vm71_vm7 }
  0xa3   :  { %v76_v38 = vpop.permute.xlu1 %75 }
  0xa4   :  { %vm80_vm5 = vcmp.eq.s32.totalorder %v45_v34, %v76_v38 }
  0xa5   :  { %vm82_vm8 = vmor %vm72_vm6, %vm80_vm5 }
  0xa6   :  { %237 = vmatprep.mubr.msk.f32.mxu0 %vm82_vm8, %v344_v39 }
  0xa7   :  { %v79_v40 = vpop.permute.xlu1 %78 }
  0xa8   :  { %vm81_vm12 = vcmp.eq.s32.totalorder %v45_v34, %v79_v40 }
  0xa9   :  { %vm83_vm13 = vmor %vm73_vm11, %vm81_vm12 }
  0xaa   :  { %238 = vmatmul.mubr.msk.f32.vlgmr.msra.gmra.mrb[0].mxu0 %vm83_vm13, %v344_v39 }
 0x17d   :  { %v239_v41 = vpop.f32.mrb[0].mxu0 }
 0x17e   :  { %165 = vst.msk [vmem:[#allocation5 + $0x8] sm:$0xff] %vm163_vm14, %v239_v41  ;;  %v154_v42 = vpop.f32.mrb[1].mxu0 }
 0x17f   :  { %164 = vst.msk [vmem:[#allocation5] sm:$0xff] %vm163_vm14, %v154_v42 }
 0x180   :  { %322 = shalt.err (!%p319_p12)
}
 0x181   :  { %s323_s30 = scalar_lea.hbm %s399_s2, 256 }
 0x182   :  { %p324_p13 = scmp.ne.s32.totalorder %s399_s2, %s323_s30  ;;  %p327_p0 = scmp.lt.u32.totalorder %s323_s30, %s399_s2 }
 0x184   :  { %p329_p1 = pnand %p327_p0, %p324_p13 }
 0x186   :  { %332 = shalt.err (!%p329_p1)
}
 0x187   :  { %177 = dma.vmem_to_hbm [thread:$0]  %s172_s1, 256, %s399_s2, [#allocation4], %s338_s19, %s338_s19, %s339_s20  }
 0x188   :  { %335 = dma.done.wait [#allocation4], 256  }
 0x189   :  { %336 = vsyncadd [#allocation4], 4294967040 }
 0x18a   :  { %181 = vsyncpa [#allocation3], 1 }
 0x18b   :  { %182 = vsyncpa [#allocation4], 1 }

</bundles_post_ra>
